<compile_context>
chip_gen: v5e
topology: v5e:2x2
jax: 0.10.0
libtpu: 0.0.40
codegen_flags: <defaults>
</compile_context>

<pallas_src>
import jax
import jax.numpy as jnp
from jax import lax
from jax.experimental import pallas as pl
from jax.experimental.pallas import tpu as pltpu


def unet_innermost_kernel(xpad_ref, style_ref, wdown_ref, wup_s_ref, wup_e_ref,
                          gamma4_ref, beta4_ref, encode_ref, dec_ref):
    C = dec_ref.shape[1] // 4                              # outer_nc
    inv_cnt = 1.0 / (4.0 * xpad_ref.shape[0])              # 1 / (batch * 2 * 2)

    # ---- down path: LeakyReLU(0.2) then Conv2d(k=4,s=2,p=1) as one matmul (output is 1x1) ----
    xp = xpad_ref[...]                                     # (N, C_in*16); leaky(0)=0 so padding is safe
    h = jnp.where(xp >= 0, xp, 0.2 * xp)
    enc = jnp.dot(h, wdown_ref[...], preferred_element_type=jnp.float32)   # (N, inner_nc)
    encode_ref[...] = enc                                  # written once

    # ---- up path: ReLU(cat([style, encode])) -> ConvTranspose2d(k=4,s=2,p=1), 1x1 -> 2x2 ----
    # Split-at-concat fused weights: two full-width matmuls summed, no per-position slicing.
    rs = jnp.maximum(style_ref[...], 0.0)                  # ReLU on the style half
    re = jnp.maximum(enc, 0.0)                             # ReLU on the encode half (reused from vregs)
    d = (jnp.dot(rs, wup_s_ref[...], preferred_element_type=jnp.float32)
         + jnp.dot(re, wup_e_ref[...], preferred_element_type=jnp.float32))  # (N, 4*C), col = p*C + co

    # ---- BatchNorm2d(outer_nc), training mode (batch statistics, biased variance, eps=1e-5) ----
    # Lanes are grouped [p0|p1|p2|p3], each of width C.  Summing the 4 cyclic lane-rotations by
    # multiples of C gives, in every lane, the sum over the 4 spatial positions of that lane's
    # channel -> per-channel stats already replicated across all position groups.
    def pos_sum(t):
        return (t
                + pltpu.roll(t, C, axis=1)
                + pltpu.roll(t, 2 * C, axis=1)
                + pltpu.roll(t, 3 * C, axis=1))

    mean4 = jnp.sum(pos_sum(d), axis=0, keepdims=True) * inv_cnt            # (1, 4*C)
    dc = d - mean4
    var4 = jnp.sum(pos_sum(dc * dc), axis=0, keepdims=True) * inv_cnt       # (1, 4*C)
    scale4 = gamma4_ref[...] * lax.rsqrt(var4 + 1e-5)      # gamma folded into a single scale (EUP rsqrt)
    dec_ref[...] = dc * scale4 + beta4_ref[...]            # single lane-dense store


def unet_innermost_forward(x, style, w_down, w_up, gamma, beta,
                           *, outer_nc, inner_nc, embedding_dim):
    N, Cin, H, W = x.shape
    assert H == 2 and W == 2, "innermost block expects 2x2 input (encode spatial must be 1x1)"

    # Conv2d(k=4,s=2,p=1) on 2x2 input: pad to 4x4, output is 1x1 -> pure matmul.
    xpad_flat = jnp.pad(x, ((0, 0), (0, 0), (1, 1), (1, 1))).reshape(N, Cin * 16)
    wdown_flat = w_down.reshape(inner_nc, Cin * 16).T                # (Cin*16, inner_nc)

    # ConvTranspose2d(k=4,s=2,p=1) on 1x1 input: out[oh,ow] uses kernel tap [oh+1, ow+1].
    wu = w_up[:, :, 1:3, 1:3].transpose(0, 2, 3, 1)                  # (Cin_up, 2, 2, outer_nc)
    wu = wu.reshape(inner_nc + embedding_dim, 4 * outer_nc)          # column = (oh*2+ow)*outer_nc + co
    wup_style = wu[:embedding_dim]                                   # style channels come first
    wup_enc = wu[embedding_dim:]

    # gamma/beta pre-tiled to the (position, channel) lane layout of dec.
    gamma4 = jnp.tile(gamma, 4).reshape(1, 4 * outer_nc)
    beta4 = jnp.tile(beta, 4).reshape(1, 4 * outer_nc)

    vmem = pl.BlockSpec(memory_space=pltpu.MemorySpace.VMEM)
    encode, dec_flat = pl.pallas_call(
        unet_innermost_kernel,
        out_shape=(jax.ShapeDtypeStruct((N, inner_nc), jnp.float32),
                   jax.ShapeDtypeStruct((N, 4 * outer_nc), jnp.float32)),
        in_specs=[vmem] * 7,
        out_specs=(vmem, vmem),
    )(xpad_flat, style, wdown_flat, wup_style, wup_enc, gamma4, beta4)

    # back to NCHW: dec_flat column index is (oh, ow, co)
    dec = dec_flat.reshape(N, 2, 2, outer_nc).transpose(0, 3, 1, 2)  # (N, outer_nc, 2, 2)
    out = jnp.concatenate([x, dec], axis=1)                          # torch.cat([x, dec], 1)
    return out, encode                                               # encode.view(N, -1)


def reference_forward(x, style, w_down, w_up, gamma, beta,
                      *, outer_nc, inner_nc, embedding_dim):
    """Pure-JAX reference with the PyTorch semantics (training-mode BatchNorm)."""
    N = x.shape[0]
    h = jnp.where(x >= 0, x, 0.2 * x)
    enc = lax.conv_general_dilated(h, w_down, window_strides=(2, 2),
                                   padding=((1, 1), (1, 1)),
                                   dimension_numbers=('NCHW', 'OIHW', 'NCHW'))  # (N, inner, 1, 1)
    encode_flat = enc.reshape(N, inner_nc)
    r = jnp.maximum(jnp.concatenate([style, encode_flat], axis=1), 0.0)         # ReLU(cat([style, enc]))
    dec_pre = jnp.einsum('ni,iohw->nohw', r, w_up[:, :, 1:3, 1:3])              # ConvT 1x1 -> 2x2
    mean = jnp.mean(dec_pre, axis=(0, 2, 3), keepdims=True)
    var = jnp.mean((dec_pre - mean) ** 2, axis=(0, 2, 3), keepdims=True)
    dec = (dec_pre - mean) * lax.rsqrt(var + 1e-5)
    dec = dec * gamma.reshape(1, -1, 1, 1) + beta.reshape(1, -1, 1, 1)
    return jnp.concatenate([x, dec], axis=1), encode_flat


if __name__ == "__main__":
    # small, innermost-consistent shapes; chosen so the dec output is fully lane-dense
    # (4*outer_nc = 128 lanes) and the batch fills 8 sublanes.
    N, outer_nc, inner_nc, embedding_dim = 8, 32, 64, 64
    input_nc = outer_nc            # input_nc=None -> input_nc = outer_nc
    H = W = 2                      # innermost sees 2x2 spatial

    key = jax.random.PRNGKey(0)
    kx, ks, kd, ku, kg, kb = jax.random.split(key, 6)
    x = jax.random.normal(kx, (N, input_nc, H, W), jnp.float32)
    style = jax.random.normal(ks, (N, embedding_dim), jnp.float32)
    # deterministic synthetic parameters (Conv2d: OIHW, ConvTranspose2d: (in, out, kH, kW))
    w_down = 0.1 * jax.random.normal(kd, (inner_nc, input_nc, 4, 4), jnp.float32)
    w_up = 0.1 * jax.random.normal(ku, (inner_nc + embedding_dim, outer_nc, 4, 4), jnp.float32)
    gamma = 1.0 + 0.1 * jax.random.normal(kg, (outer_nc,), jnp.float32)
    beta = 0.1 * jax.random.normal(kb, (outer_nc,), jnp.float32)

    out, encode = unet_innermost_forward(x, style, w_down, w_up, gamma, beta,
                                         outer_nc=outer_nc, inner_nc=inner_nc,
                                         embedding_dim=embedding_dim)
    out = jax.block_until_ready(out)
    encode = jax.block_until_ready(encode)

    # sanity check against a pure-JAX reference
    out_ref, encode_ref = reference_forward(x, style, w_down, w_up, gamma, beta,
                                            outer_nc=outer_nc, inner_nc=inner_nc,
                                            embedding_dim=embedding_dim)
    assert out.shape == (N, 2 * outer_nc, 2, 2) and encode.shape == (N, inner_nc)
    assert jnp.allclose(out, out_ref, atol=1e-4, rtol=1e-4)
    assert jnp.allclose(encode, encode_ref, atol=1e-4, rtol=1e-4)

    print("KERNEL_OK")
</pallas_src>

<mosaic_0001>
module attributes {stable_mosaic.version = 11 : i64} {
  func.func @unet_innermost_kernel(%arg0: memref<8x512xf32, #tpu.memory_space<vmem>>, %arg1: memref<8x64xf32, #tpu.memory_space<vmem>>, %arg2: memref<512x64xf32, #tpu.memory_space<vmem>>, %arg3: memref<64x128xf32, #tpu.memory_space<vmem>>, %arg4: memref<64x128xf32, #tpu.memory_space<vmem>>, %arg5: memref<1x128xf32, #tpu.memory_space<vmem>>, %arg6: memref<1x128xf32, #tpu.memory_space<vmem>>, %arg7: memref<8x64xf32, #tpu.memory_space<vmem>>, %arg8: memref<8x128xf32, #tpu.memory_space<vmem>>) attributes {dimension_semantics = [], scalar_prefetch = 0 : i64, scratch_operands = 0 : i64, tpu.core_type = #tpu.core_type<tc>} {
    %c0 = arith.constant 0 : index
    %c0_0 = arith.constant 0 : index
    %0 = vector.load %arg0[%c0, %c0_0] : memref<8x512xf32, #tpu.memory_space<vmem>>, vector<8x512xf32>
    %cst = arith.constant 0.000000e+00 : f32
    %1 = vector.broadcast %cst : f32 to vector<8x512xf32>
    %2 = arith.cmpf oge, %0, %1 : vector<8x512xf32>
    %cst_1 = arith.constant 2.000000e-01 : f32
    %3 = vector.broadcast %cst_1 : f32 to vector<8x512xf32>
    %4 = arith.mulf %3, %0 : vector<8x512xf32>
    %5 = arith.select %2, %0, %4 : vector<8x512xi1>, vector<8x512xf32>
    %c0_2 = arith.constant 0 : index
    %c0_3 = arith.constant 0 : index
    %6 = vector.load %arg2[%c0_2, %c0_3] : memref<512x64xf32, #tpu.memory_space<vmem>>, vector<512x64xf32>
    %cst_4 = arith.constant dense<0.000000e+00> : vector<8x64xf32>
    %7 = tpu.matmul %5, %6, %cst_4 {dimension_numbers = #tpu.dot_dimension_numbers<[1], [0], [0], [1], [0, 0, 1, 1], [], []>} : vector<8x512xf32>, vector<512x64xf32>, vector<8x64xf32> -> vector<8x64xf32>
    %c0_5 = arith.constant 0 : index
    %c0_6 = arith.constant 0 : index
    %8 = vector.load %arg7[%c0_5, %c0_6] : memref<8x64xf32, #tpu.memory_space<vmem>>, vector<8x64xf32>
    tpu.vector_store %arg7[%c0_5, %c0_6], %7 {strides = array<i32>} : memref<8x64xf32, #tpu.memory_space<vmem>>, vector<8x64xf32>,
    %c0_7 = arith.constant 0 : index
    %c0_8 = arith.constant 0 : index
    %9 = vector.load %arg1[%c0_7, %c0_8] : memref<8x64xf32, #tpu.memory_space<vmem>>, vector<8x64xf32>
    %cst_9 = arith.constant 0.000000e+00 : f32
    %10 = vector.broadcast %cst_9 : f32 to vector<8x64xf32>
    %11 = arith.maximumf %9, %10 : vector<8x64xf32>
    %cst_10 = arith.constant 0.000000e+00 : f32
    %12 = vector.broadcast %cst_10 : f32 to vector<8x64xf32>
    %13 = arith.maximumf %7, %12 : vector<8x64xf32>
    %c0_11 = arith.constant 0 : index
    %c0_12 = arith.constant 0 : index
    %14 = vector.load %arg3[%c0_11, %c0_12] : memref<64x128xf32, #tpu.memory_space<vmem>>, vector<64x128xf32>
    %cst_13 = arith.constant dense<0.000000e+00> : vector<8x128xf32>
    %15 = tpu.matmul %11, %14, %cst_13 {dimension_numbers = #tpu.dot_dimension_numbers<[1], [0], [0], [1], [0, 0, 1, 1], [], []>} : vector<8x64xf32>, vector<64x128xf32>, vector<8x128xf32> -> vector<8x128xf32>
    %c0_14 = arith.constant 0 : index
    %c0_15 = arith.constant 0 : index
    %16 = vector.load %arg4[%c0_14, %c0_15] : memref<64x128xf32, #tpu.memory_space<vmem>>, vector<64x128xf32>
    %cst_16 = arith.constant dense<0.000000e+00> : vector<8x128xf32>
    %17 = tpu.matmul %13, %16, %cst_16 {dimension_numbers = #tpu.dot_dimension_numbers<[1], [0], [0], [1], [0, 0, 1, 1], [], []>} : vector<8x64xf32>, vector<64x128xf32>, vector<8x128xf32> -> vector<8x128xf32>
    %18 = arith.addf %15, %17 : vector<8x128xf32>
    %c32_i32 = arith.constant 32 : i32
    %19 = tpu.dynamic_rotate %18 by %c32_i32 dim 1 : vector<8x128xf32>, i32 -> vector<8x128xf32>
    %20 = arith.addf %18, %19 : vector<8x128xf32>
    %c64_i32 = arith.constant 64 : i32
    %21 = tpu.dynamic_rotate %18 by %c64_i32 dim 1 : vector<8x128xf32>, i32 -> vector<8x128xf32>
    %22 = arith.addf %20, %21 : vector<8x128xf32>
    %c96_i32 = arith.constant 96 : i32
    %23 = tpu.dynamic_rotate %18 by %c96_i32 dim 1 : vector<8x128xf32>, i32 -> vector<8x128xf32>
    %24 = arith.addf %22, %23 : vector<8x128xf32>
    %cst_17 = arith.constant dense<0.000000e+00> : vector<128xf32>
    %25 = vector.multi_reduction <add>, %24, %cst_17 [0] : vector<8x128xf32> to vector<128xf32>
    %26 = vector.shape_cast %25 : vector<128xf32> to vector<1x128xf32>
    %cst_18 = arith.constant 3.125000e-02 : f32
    %27 = vector.broadcast %cst_18 : f32 to vector<1x128xf32>
    %28 = arith.mulf %26, %27 : vector<1x128xf32>
    %29 = vector.broadcast %28 : vector<1x128xf32> to vector<8x128xf32>
    %30 = arith.subf %18, %29 : vector<8x128xf32>
    %31 = arith.mulf %30, %30 : vector<8x128xf32>
    %c32_i32_19 = arith.constant 32 : i32
    %32 = tpu.dynamic_rotate %31 by %c32_i32_19 dim 1 : vector<8x128xf32>, i32 -> vector<8x128xf32>
    %33 = arith.addf %31, %32 : vector<8x128xf32>
    %c64_i32_20 = arith.constant 64 : i32
    %34 = tpu.dynamic_rotate %31 by %c64_i32_20 dim 1 : vector<8x128xf32>, i32 -> vector<8x128xf32>
    %35 = arith.addf %33, %34 : vector<8x128xf32>
    %c96_i32_21 = arith.constant 96 : i32
    %36 = tpu.dynamic_rotate %31 by %c96_i32_21 dim 1 : vector<8x128xf32>, i32 -> vector<8x128xf32>
    %37 = arith.addf %35, %36 : vector<8x128xf32>
    %cst_22 = arith.constant dense<0.000000e+00> : vector<128xf32>
    %38 = vector.multi_reduction <add>, %37, %cst_22 [0] : vector<8x128xf32> to vector<128xf32>
    %39 = vector.shape_cast %38 : vector<128xf32> to vector<1x128xf32>
    %cst_23 = arith.constant 3.125000e-02 : f32
    %40 = vector.broadcast %cst_23 : f32 to vector<1x128xf32>
    %41 = arith.mulf %39, %40 : vector<1x128xf32>
    %c0_24 = arith.constant 0 : index
    %c0_25 = arith.constant 0 : index
    %42 = vector.load %arg5[%c0_24, %c0_25] : memref<1x128xf32, #tpu.memory_space<vmem>>, vector<1x128xf32>
    %cst_26 = arith.constant 9.99999974E-6 : f32
    %43 = vector.broadcast %cst_26 : f32 to vector<1x128xf32>
    %44 = arith.addf %41, %43 : vector<1x128xf32>
    %45 = math.rsqrt %44 : vector<1x128xf32>
    %46 = arith.mulf %42, %45 : vector<1x128xf32>
    %47 = vector.broadcast %46 : vector<1x128xf32> to vector<8x128xf32>
    %48 = arith.mulf %30, %47 : vector<8x128xf32>
    %c0_27 = arith.constant 0 : index
    %c0_28 = arith.constant 0 : index
    %49 = vector.load %arg6[%c0_27, %c0_28] : memref<1x128xf32, #tpu.memory_space<vmem>>, vector<1x128xf32>
    %50 = vector.broadcast %49 : vector<1x128xf32> to vector<8x128xf32>
    %51 = arith.addf %48, %50 : vector<8x128xf32>
    %c0_29 = arith.constant 0 : index
    %c0_30 = arith.constant 0 : index
    %52 = vector.load %arg8[%c0_29, %c0_30] : memref<8x128xf32, #tpu.memory_space<vmem>>, vector<8x128xf32>
    tpu.vector_store %arg8[%c0_29, %c0_30], %51 {strides = array<i32>} : memref<8x128xf32, #tpu.memory_space<vmem>>, vector<8x128xf32>,
    return
  }
}

</mosaic_0001>

<bundles_post_ra>
// kernel: tpu_custom_call.1
= control target key start
LH: loop header
LB: loop body
LE: loop exit
PB: predicated region body
PF: predicated region fallthrough
CT: control target
= control target key end

     0   :  { %14 = vsyncpa [#allocation3], 0  ;;  %s727_s0 = inlined_call_operand.vmem [shape: f32[8,512], index: 0, kind: input, shape index: {}]   ;;  %s728_s1 = inlined_call_operand.vmem [shape: f32[8,64], index: 1, kind: input, shape index: {}]   ;;  %s729_s2 = inlined_call_operand.vmem [shape: f32[512,64], index: 2, kind: input, shape index: {}]   ;;  %s730_s3 = inlined_call_operand.vmem [shape: f32[64,128], index: 3, kind: input, shape index: {}]   ;;  %s731_s4 = inlined_call_operand.vmem [shape: f32[64,128], index: 4, kind: input, shape index: {}]   ;;  %s732_s5 = inlined_call_operand.vmem [shape: f32[1,128], index: 5, kind: input, shape index: {}]   ;;  %s733_s6 = inlined_call_operand.vmem [shape: f32[1,128], index: 6, kind: input, shape index: {}]   ;;  %s734_s7 = inlined_call_operand.hbm [shape: f32[8,64], index: 7, kind: output, shape index: {0}]   ;;  %s735_s8 = inlined_call_operand.hbm [shape: f32[8,128], index: 8, kind: output, shape index: {1}]  }
   0x1   :  { %v93_v0 = vld [vmem:[%s729_s2 + $0x178] sm:$0xff]  ;;  %v92_v1 = vld [vmem:[%s729_s2 + $0x170] sm:$0xff]  ;;  %v91_v5 = vld [vmem:[%s729_s2 + $0x168] sm:$0xff] }
   0x2   :  { %v109_v2 = vld [vmem:[%s729_s2 + $0x1f8] sm:$0xff]  ;;  %150 = vmatpush.msra.mxu2 %v93_v0  ;;  %v108_v6 = vld [vmem:[%s729_s2 + $0x1f0] sm:$0xff]  ;;  %v107_v9 = vld [vmem:[%s729_s2 + $0x1e8] sm:$0xff] }
   0x3   :  { %170 = vmatpush.msra.mxu3 %v109_v2  ;;  %v61_v3 = vld [vmem:[%s729_s2 + $0x78] sm:$0xff]  ;;  %v60_v7 = vld [vmem:[%s729_s2 + $0x70] sm:$0xff]  ;;  %v59_v10 = vld [vmem:[%s729_s2 + $0x68] sm:$0xff] }
   0x4   :  { %v77_v4 = vld [vmem:[%s729_s2 + $0xf8] sm:$0xff]  ;;  %110 = vmatpush.msra.mxu0 %v61_v3  ;;  %v76_v8 = vld [vmem:[%s729_s2 + $0xf0] sm:$0xff]  ;;  %151 = vmatpush.msra.mxu2 %v92_v1  ;;  %v90_v11 = vld [vmem:[%s729_s2 + $0x160] sm:$0xff] }
   0x5   :  { %130 = vmatpush.msra.mxu1 %v77_v4  ;;  %171 = vmatpush.msra.mxu3 %v108_v6  ;;  %v75_v12 = vld [vmem:[%s729_s2 + $0xe8] sm:$0xff]  ;;  %v106_v13 = vld [vmem:[%s729_s2 + $0x1e0] sm:$0xff]  ;;  %v89_v16 = vld [vmem:[%s729_s2 + $0x158] sm:$0xff] }
   0x6   :  { %111 = vmatpush.msra.mxu0 %v60_v7  ;;  %152 = vmatpush.msra.mxu2 %v91_v5  ;;  %v58_v14 = vld [vmem:[%s729_s2 + $0x60] sm:$0xff]  ;;  %v105_v17 = vld [vmem:[%s729_s2 + $0x1d8] sm:$0xff]  ;;  %v88_v20 = vld [vmem:[%s729_s2 + $0x150] sm:$0xff] }
   0x7   :  { %131 = vmatpush.msra.mxu1 %v76_v8  ;;  %172 = vmatpush.msra.mxu3 %v107_v9  ;;  %v74_v15 = vld [vmem:[%s729_s2 + $0xe0] sm:$0xff]  ;;  %v57_v18 = vld [vmem:[%s729_s2 + $0x58] sm:$0xff]  ;;  %v104_v21 = vld [vmem:[%s729_s2 + $0x1d0] sm:$0xff] }
   0x8   :  { %112 = vmatpush.msra.mxu0 %v59_v10  ;;  %153 = vmatpush.msra.mxu2 %v90_v11  ;;  %v73_v19 = vld [vmem:[%s729_s2 + $0xd8] sm:$0xff]  ;;  %v56_v22 = vld [vmem:[%s729_s2 + $0x50] sm:$0xff]  ;;  %v87_v24 = vld [vmem:[%s729_s2 + $0x148] sm:$0xff] }
   0x9   :  { %132 = vmatpush.msra.mxu1 %v75_v12  ;;  %173 = vmatpush.msra.mxu3 %v106_v13  ;;  %v72_v23 = vld [vmem:[%s729_s2 + $0xd0] sm:$0xff]  ;;  %v103_v25 = vld [vmem:[%s729_s2 + $0x1c8] sm:$0xff]  ;;  %v86_v28 = vld [vmem:[%s729_s2 + $0x140] sm:$0xff] }
   0xa   :  { %113 = vmatpush.msra.mxu0 %v58_v14  ;;  %154 = vmatpush.msra.mxu2 %v89_v16  ;;  %v55_v26 = vld [vmem:[%s729_s2 + $0x48] sm:$0xff]  ;;  %v102_v29 = vld [vmem:[%s729_s2 + $0x1c0] sm:$0xff]  ;;  %v85_v32 = vld [vmem:[%s729_s2 + $0x138] sm:$0xff] }
   0xb   :  { %133 = vmatpush.msra.mxu1 %v74_v15  ;;  %174 = vmatpush.msra.mxu3 %v105_v17  ;;  %v71_v27 = vld [vmem:[%s729_s2 + $0xc8] sm:$0xff]  ;;  %v54_v30 = vld [vmem:[%s729_s2 + $0x40] sm:$0xff]  ;;  %v101_v33 = vld [vmem:[%s729_s2 + $0x1b8] sm:$0xff] }
   0xc   :  { %114 = vmatpush.msra.mxu0 %v57_v18  ;;  %155 = vmatpush.msra.mxu2 %v88_v20  ;;  %v70_v31 = vld [vmem:[%s729_s2 + $0xc0] sm:$0xff]  ;;  %v53_v34 = vld [vmem:[%s729_s2 + $0x38] sm:$0xff]  ;;  %v84_v36 = vld [vmem:[%s729_s2 + $0x130] sm:$0xff] }
   0xd   :  { %134 = vmatpush.msra.mxu1 %v73_v19  ;;  %175 = vmatpush.msra.mxu3 %v104_v21  ;;  %v69_v35 = vld [vmem:[%s729_s2 + $0xb8] sm:$0xff]  ;;  %v100_v37 = vld [vmem:[%s729_s2 + $0x1b0] sm:$0xff]  ;;  %v83_v40 = vld [vmem:[%s729_s2 + $0x128] sm:$0xff] }
   0xe   :  { %115 = vmatpush.msra.mxu0 %v56_v22  ;;  %156 = vmatpush.msra.mxu2 %v87_v24  ;;  %v52_v38 = vld [vmem:[%s729_s2 + $0x30] sm:$0xff]  ;;  %v99_v41 = vld [vmem:[%s729_s2 + $0x1a8] sm:$0xff]  ;;  %v82_v44 = vld [vmem:[%s729_s2 + $0x120] sm:$0xff] }
   0xf   :  { %135 = vmatpush.msra.mxu1 %v72_v23  ;;  %176 = vmatpush.msra.mxu3 %v103_v25  ;;  %v68_v39 = vld [vmem:[%s729_s2 + $0xb0] sm:$0xff]  ;;  %v51_v42 = vld [vmem:[%s729_s2 + $0x28] sm:$0xff]  ;;  %v81_v45 = vld [vmem:[%s729_s2 + $0x118] sm:$0xff] }
  0x10   :  { %116 = vmatpush.msra.mxu0 %v55_v26  ;;  %157 = vmatpush.msra.mxu2 %v86_v28  ;;  %v67_v43 = vld [vmem:[%s729_s2 + $0xa8] sm:$0xff]  ;;  %v98_v46 = vld [vmem:[%s729_s2 + $0x1a0] sm:$0xff]  ;;  %v97_v49 = vld [vmem:[%s729_s2 + $0x198] sm:$0xff] }
  0x11   :  { %136 = vmatpush.msra.mxu1 %v71_v27  ;;  %177 = vmatpush.msra.mxu3 %v102_v29  ;;  %v50_v47 = vld [vmem:[%s729_s2 + $0x20] sm:$0xff]  ;;  %v80_v50 = vld [vmem:[%s729_s2 + $0x110] sm:$0xff]  ;;  %v49_v51 = vld [vmem:[%s729_s2 + $0x18] sm:$0xff] }
  0x12   :  { %117 = vmatpush.msra.mxu0 %v54_v30  ;;  %158 = vmatpush.msra.mxu2 %v85_v32  ;;  %v66_v48 = vld [vmem:[%s729_s2 + $0xa0] sm:$0xff]  ;;  %v32_v52 = vld [vmem:[%s727_s0 + $0x10] sm:$0xff]  ;;  %v33_v53 = vld [vmem:[%s727_s0 + $0x18] sm:$0xff] }
  0x13   :  { %137 = vmatpush.msra.mxu1 %v70_v31  ;;  %178 = vmatpush.msra.mxu3 %v101_v33  ;;  %v65_v54 = vld [vmem:[%s729_s2 + $0x98] sm:$0xff]  ;;  %v96_v55 = vld [vmem:[%s729_s2 + $0x190] sm:$0xff]  ;;  %v30_v58 = vld [vmem:[%s727_s0] sm:$0xff]  ;;  %v40_v60 = vmul.f32 0.2, %v32_v52 }
  0x14   :  { %118 = vmatpush.msra.mxu0 %v53_v34  ;;  %159 = vmatpush.msra.mxu2 %v84_v36  ;;  %v48_v56 = vld [vmem:[%s729_s2 + $0x10] sm:$0xff]  ;;  %v31_v59 = vld [vmem:[%s727_s0 + $0x8] sm:$0xff]  ;;  %v41_v61 = vmul.f32 0.2, %v33_v53 }
  0x15   :  { %138 = vmatpush.msra.mxu1 %v69_v35  ;;  %179 = vmatpush.msra.mxu3 %v100_v37  ;;  %v64_v57 = vld [vmem:[%s729_s2 + $0x90] sm:$0xff] }
  0x16   :  { %119 = vmatpush.msra.mxu0 %v52_v38  ;;  %160 = vmatpush.msra.mxu2 %v83_v40 }
  0x17   :  { %139 = vmatpush.msra.mxu1 %v68_v39  ;;  %180 = vmatpush.msra.mxu3 %v99_v41 }
  0x18   :  { %120 = vmatpush.msra.mxu0 %v51_v42  ;;  %161 = vmatpush.msra.mxu2 %v82_v44 }
  0x19   :  { %140 = vmatpush.msra.mxu1 %v67_v43  ;;  %181 = vmatpush.msra.mxu3 %v98_v46 }
  0x1a   :  { %121 = vmatpush.msra.mxu0 %v50_v47  ;;  %162 = vmatpush.msra.mxu2 %v81_v45 }
  0x1b   :  { %141 = vmatpush.msra.mxu1 %v66_v48  ;;  %182 = vmatpush.msra.mxu3 %v97_v49 }
  0x1c   :  { %15 = vsyncpa [#allocation5], 0  ;;  %122 = vmatpush.msra.mxu0 %v49_v51  ;;  %v79_v62 = vld [vmem:[%s729_s2 + $0x108] sm:$0xff]  ;;  %vm36_vm0 = vcmp.ge.f32.partialorder %v32_v52, 0.0  ;;  %vm37_vm1 = vcmp.ge.f32.partialorder %v33_v53, 0.0  ;;  %163 = vmatpush.msra.mxu2 %v80_v50  ;;  %v78_v4 = vld [vmem:[%s729_s2 + $0x100] sm:$0xff] }
  0x1d   :  { %142 = vmatpush.msra.mxu1 %v65_v54  ;;  %v95_v63 = vld [vmem:[%s729_s2 + $0x188] sm:$0xff]  ;;  %183 = vmatpush.msra.mxu3 %v96_v55  ;;  %v38_v2 = vmul.f32 0.2, %v30_v58  ;;  %v39_v3 = vmul.f32 0.2, %v31_v59  ;;  %v94_v5 = vld [vmem:[%s729_s2 + $0x180] sm:$0xff]  ;;  %v44_v6 = vsel %vm36_vm0, %v32_v52, %v40_v60  ;;  %v45_v7 = vsel %vm37_vm1, %v33_v53, %v41_v61 }
  0x1e   :  { %v47_v0 = vld [vmem:[%s729_s2 + $0x8] sm:$0xff]  ;;  %123 = vmatpush.msra.mxu0 %v48_v56  ;;  %vm34_vm2 = vcmp.ge.f32.partialorder %v30_v58, 0.0  ;;  %vm35_vm3 = vcmp.ge.f32.partialorder %v31_v59, 0.0  ;;  %164 = vmatpush.msra.mxu2 %v79_v62  ;;  %v46_v8 = vld [vmem:[%s729_s2] sm:$0xff]  ;;  %v210_v12 = vld [vmem:[%s731_s4 + $0x38] sm:$0xff]  ;;  %vm190_vm4 = vcmask 523264  }
  0x1f   :  { %v63_v1 = vld [vmem:[%s729_s2 + $0x88] sm:$0xff]  ;;  %143 = vmatpush.msra.mxu1 %v64_v57  ;;  %184 = vmatpush.msra.mxu3 %v95_v63  ;;  %v62_v9 = vld [vmem:[%s729_s2 + $0x80] sm:$0xff]  ;;  %v42_v10 = vsel %vm34_vm2, %v30_v58, %v38_v2  ;;  %v43_v11 = vsel %vm35_vm3, %v31_v59, %v39_v3  ;;  %v202_v13 = vld [vmem:[%s730_s3 + $0x38] sm:$0xff]  ;;  %s321_s0 = sshll.u32 %s734_s7, 4  ;;  %s411_s19 = smov [#allocation2]   ;;  %s322_s0 = int_to_ptr.hbm [resolvable:$true] %s321_s0 }
  0x20   :  { %124 = vmatpush.msra.mxu0 %v47_v0  ;;  %165 = vmatpush.msra.mxu2 %v78_v4  ;;  %v209_v14 = vld [vmem:[%s731_s4 + $0x30] sm:$0xff]  ;;  %v208_v16 = vld [vmem:[%s731_s4 + $0x28] sm:$0xff]  ;;  %v207_v18 = vld [vmem:[%s731_s4 + $0x20] sm:$0xff]  ;;  %s319_s20 = sshll.u32 %s411_s19, 4  ;;  %s412_s24 = smov [#allocation4]   ;;  %s320_s20 = int_to_ptr.vmem [resolvable:$true] %s319_s20 }
  0x21   :  { %144 = vmatpush.msra.mxu1 %v63_v1  ;;  %185 = vmatpush.msra.mxu3 %v94_v5  ;;  %v201_v15 = vld [vmem:[%s730_s3 + $0x30] sm:$0xff]  ;;  %v200_v17 = vld [vmem:[%s730_s3 + $0x28] sm:$0xff]  ;;  %v199_v19 = vld [vmem:[%s730_s3 + $0x20] sm:$0xff]  ;;  %s330_s25 = sshll.u32 %s412_s24, 4  ;;  %s332_s28 = sshll.u32 %s735_s8, 4  ;;  %s331_s25 = int_to_ptr.vmem [resolvable:$true] %s330_s25  ;;  %s333_s28 = int_to_ptr.hbm [resolvable:$true] %s332_s28 }
  0x22   :  { %166 = vmatmul.f32.vlgmr.msra.gmra.mxu2 %v44_v6  ;;  %186 = vmatmul.f32.vlgmr.msra.gmra.mxu3 %v45_v7  ;;  %v206_v20 = vld [vmem:[%s731_s4 + $0x18] sm:$0xff]  ;;  %v205_v22 = vld [vmem:[%s731_s4 + $0x10] sm:$0xff]  ;;  %v204_v24 = vld [vmem:[%s731_s4 + $0x8] sm:$0xff] }
  0x23   :  { %125 = vmatpush.msra.mxu0 %v46_v8  ;;  %145 = vmatpush.msra.mxu1 %v62_v9  ;;  %v198_v21 = vld [vmem:[%s730_s3 + $0x18] sm:$0xff]  ;;  %v197_v23 = vld [vmem:[%s730_s3 + $0x10] sm:$0xff]  ;;  %v196_v25 = vld [vmem:[%s730_s3 + $0x8] sm:$0xff] }
  0x24   :  { %126 = vmatmul.f32.vlgmr.msra.gmra.mxu0 %v42_v10  ;;  %146 = vmatmul.f32.vlgmr.msra.gmra.mxu1 %v43_v11  ;;  %v192_v26 = vld [vmem:[%s728_s1] sm:$0xff]  ;;  %s408_s1 = smov 96  }
  0x25   :  { %222 = vmatpush.msrb.mxu0 %v210_v12  ;;  %245 = vmatpush.msrb.mxu1 %v202_v13  ;;  %v203_v27 = vld [vmem:[%s731_s4] sm:$0xff]  ;;  %v193_v29 = vmax.f32 %v192_v26, 0.0  ;;  %s410_s4 = smov 64  }
  0x26   :  { %v195_v28 = vld [vmem:[%s730_s3] sm:$0xff]  ;;  %s409_s3 = smov 32  }
  0x27   :  { %223 = vmatpush.msrb.mxu0 %v209_v14  ;;  %246 = vmatpush.msrb.mxu1 %v201_v15  ;;  %v291_v11 = vld [vmem:[%s732_s5] sm:$0x1] }
  0x29   :  { %224 = vmatpush.msrb.mxu0 %v208_v16  ;;  %247 = vmatpush.msrb.mxu1 %v200_v17  ;;  %v353_v16 = vld [vmem:[%s733_s6] ss:$0 sm:$0xff] }
  0x2b   :  { %225 = vmatpush.msrb.mxu0 %v207_v18  ;;  %248 = vmatpush.msrb.mxu1 %v199_v19 }
  0x2d   :  { %226 = vmatpush.msrb.mxu0 %v206_v20  ;;  %249 = vmatpush.msrb.mxu1 %v198_v21 }
  0x2f   :  { %227 = vmatpush.msrb.mxu0 %v205_v22  ;;  %250 = vmatpush.msrb.mxu1 %v197_v23 }
  0x31   :  { %228 = vmatpush.msrb.mxu0 %v204_v24  ;;  %251 = vmatpush.msrb.mxu1 %v196_v25 }
  0x33   :  { %229 = vmatpush.msrb.mxu0 %v203_v27  ;;  %252 = vmatpush.msrb.mxu1 %v195_v28 }
  0x34   :  { %347 = vmatmul.msk.f32.vlgmr.msrb.gmra.mxu1 %vm190_vm4, %v193_v29 }
  0xa1   :  { %v127_v30 = vpop.f32.mrf.mxu0  ;;  %v147_v31 = vpop.f32.mrf.mxu1 }
  0xa2   :  { %v148_v32 = vadd.f32 %v147_v31, %v127_v30 }
  0xa5   :  { %v167_v33 = vpop.f32.mrf.mxu2  ;;  %v187_v34 = vpop.f32.mrf.mxu3 }
  0xa6   :  { %v168_v35 = vadd.f32 %v167_v33, %v148_v32 }
  0xa8   :  { %v188_v36 = vadd.f32 %v187_v34, %v168_v35 }
  0xaa   :  { %v194_v37 = vmax.f32 %v188_v36, 0.0  ;;  %191 = vst.msk [vmem:[#allocation2] sm:$0xff] %vm190_vm4, %v188_v36 }
  0xab   :  { %324 = dma.vmem_to_hbm [thread:$0]  %s320_s20, 128, %s322_s0, [#allocation3]  }
  0xac   :  { %346 = vmatmul.msk.f32.vlgmr.msrb.gmra.mxu0 %vm190_vm4, %v194_v37 }
  0xb1   :  { %v254_v38 = vpop.f32.mrf.mxu1 }
 0x129   :  { %v231_v39 = vpop.f32.mrf.mxu0 }
 0x12a   :  { %v255_v40 = vadd.f32 %v254_v38, %v231_v39 }
 0x12c   :  { %263 = vrot.lane.b32.xlu1 %v255_v40, %s408_s1  ;;  %257 = vrot.lane.b32.xlu0 %v255_v40, %s409_s3 }
 0x134   :  { %260 = vrot.lane.b32.xlu0 %v255_v40, %s410_s4 }
 0x19e   :  { %v258_v41 = vpop.permute.xlu0 %257  ;;  %v264_v45 = vpop.permute.xlu1 %263 }
 0x19f   :  { %v259_v42 = vadd.f32 %v258_v41, %v255_v40 }
 0x1a6   :  { %v261_v43 = vpop.permute.xlu0 %260 }
 0x1a7   :  { %v262_v44 = vadd.f32 %v261_v43, %v259_v42 }
 0x1a9   :  { %v265_v46 = vadd.f32 %v264_v45, %v262_v44 }
 0x1ab   :  { %v266_v47 = vrot.slane %v265_v46, 4 }
 0x1ad   :  { %v267_v48 = vadd.f32 %v266_v47, %v265_v46 }
 0x1af   :  { %v268_v49 = vrot.slane %v267_v48, 2 }
 0x1b1   :  { %v269_v50 = vadd.f32 %v268_v49, %v267_v48 }
 0x1b3   :  { %v270_v51 = vrot.slane %v269_v50, 1 }
 0x1b5   :  { %v271_v52 = vadd.f32 %v270_v51, %v269_v50 }
 0x1b7   :  { %v272_v53 = vmul.f32 0.03125, %v271_v52 }
 0x1b9   :  { %v273_v54 = vsub.f32 %v255_v40, %v272_v53 }
 0x1bb   :  { %v274_v55 = vmul.f32 %v273_v54, %v273_v54 }
 0x1bd   :  { %278 = vrot.lane.b32.xlu2 %v274_v55, %s410_s4  ;;  %275 = vrot.lane.b32.xlu1 %v274_v55, %s409_s3 }
 0x1c5   :  { %281 = vrot.lane.b32.xlu2 %v274_v55, %s408_s1 }
 0x217   :  { %v279_v56 = vpop.permute.xlu2 %278 }
 0x21f   :  { %v282_v60 = vpop.permute.xlu2 %281 }
 0x22f   :  { %v276_v57 = vpop.permute.xlu1 %275 }
 0x230   :  { %v277_v58 = vadd.f32 %v276_v57, %v274_v55 }
 0x232   :  { %v280_v59 = vadd.f32 %v279_v56, %v277_v58 }
 0x234   :  { %v283_v61 = vadd.f32 %v282_v60, %v280_v59 }
 0x236   :  { %v284_v62 = vrot.slane %v283_v61, 4 }
 0x238   :  { %v285_v63 = vadd.f32 %v284_v62, %v283_v61 }
 0x23a   :  { %v286_v0 = vrot.slane %v285_v63, 2 }
 0x23c   :  { %v287_v1 = vadd.f32 %v286_v0, %v285_v63 }
 0x23e   :  { %v288_v2 = vrot.slane %v287_v1, 1 }
 0x240   :  { %v289_v3 = vadd.f32 %v288_v2, %v287_v1 }
 0x242   :  { %v290_v4 = vmul.f32 0.03125, %v289_v3 }
 0x244   :  { %v292_v5 = vadd.f32 1e-05, %v290_v4 }
 0x246   :  { %354 = vrsqrt.f32 %v292_v5  ;;  %vm299_vm6 = vweird.f32 %v292_v5 }
 0x24c   :  { %v355_v6 = vpop.eup %354 }
 0x24d   :  { %v294_v7 = vmul.f32 %v355_v6, %v292_v5  ;;  %vm300_vm5 = vweird.f32 %v355_v6 }
 0x24e   :  { %vm301_vm7 = vmor %vm299_vm6, %vm300_vm5 }
 0x24f   :  { %v295_v8 = vmul.f32 %v355_v6, %v294_v7 }
 0x251   :  { %v296_v9 = vmul.f32 0.5, %v295_v8 }
 0x253   :  { %v297_v10 = vsub.f32 1.5, %v296_v9 }
 0x255   :  { %v298_v12 = vmul.f32 %v355_v6, %v297_v10 }
 0x257   :  { %v302_v13 = vsel %vm301_vm7, %v355_v6, %v298_v12 }
 0x258   :  { %v303_v14 = vmul.f32 %v302_v13, %v291_v11 }
 0x25a   :  { %v305_v15 = vperm.slane %v303_v14, 0 }
 0x25c   :  { %v307_v17 = vmul.f32 %v305_v15, %v273_v54 }
 0x25e   :  { %v312_v18 = vadd.f32 %v353_v16, %v307_v17 }
 0x260   :  { %313 = vst [vmem:[#allocation4] sm:$0xff] %v312_v18 }
 0x261   :  { %335 = dma.vmem_to_hbm [thread:$0]  %s331_s25, 128, %s333_s28, [#allocation5]  }
 0x262   :  { %404 = dma.done.wait [#allocation3], 128  }
 0x263   :  { %405 = vsyncadd [#allocation3], 4294967168 }
 0x264   :  { %406 = dma.done.wait [#allocation5], 128  }
 0x265   :  { %407 = vsyncadd [#allocation5], 4294967168 }
 0x266   :  { %344 = vsyncpa [#allocation3], 1 }
 0x267   :  { %345 = vsyncpa [#allocation5], 1 }

</bundles_post_ra>
